<compile_context>
chip_gen: v7x
topology: tpu7x:2x2x1
jax: 0.10.0
libtpu: 0.0.40
codegen_flags: <defaults>
</compile_context>

<pallas_src>
import functools

import jax
import jax.numpy as jnp
from jax.experimental import pallas as pl
from jax.experimental.pallas import tpu as pltpu

_INV_SQRT2 = 0.7071067811865476  # 1/sqrt(2); f32 constant applied to f32 data


def _gelu_exact_f32(x):
    # nn.GELU() default is the exact (erf-based) GELU; keep math in f32.
    return 0.5 * x * (1.0 + jax.lax.erf(x * _INV_SQRT2))


# ----------------------------------------------------------------------------
# Per-generation VMEM policy (queried once at import).
# ----------------------------------------------------------------------------
def _query_vmem_capacity():
    try:
        info = pltpu.get_tpu_info()
        for name in ("vmem_capacity_bytes", "vmem_size_bytes", "vmem_bytes"):
            cap = getattr(info, name, None)
            if cap:
                return int(cap)
    except Exception:
        pass
    return 64 * 1024 * 1024  # conservative fallback (v7x per-core VMEM)


_VMEM_CAP = _query_vmem_capacity()
_VMEM_LIMIT = int(_VMEM_CAP * 0.80)      # never request the full physical VMEM
_BLOCK_BUDGET = int(_VMEM_CAP * 0.65)    # headroom for compiler-internal scratch
_SMALL_VMEM = _VMEM_CAP <= 96 * 1024 * 1024   # v7x-like (64 MiB/TC, 2 TCs/chip)
_TM_TARGET, _TH_TARGET = (256, 512) if _SMALL_VMEM else (512, 1024)


def _round_up(v, n):
    return ((v + n - 1) // n) * n


def _pick_tile(dim, target, multiple=128):
    """Largest tile <= target that is a multiple of `multiple` and divides
    `dim`; falls back to the full dim (legal per the (8,128) BlockSpec rule)."""
    if dim <= target:
        return dim
    cand = (min(target, dim) // multiple) * multiple
    while cand >= multiple:
        if dim % cand == 0:
            return cand
        cand -= multiple
    return dim


def _fit_tiles(dim_in, dim_hidden, dim_out, tm, th, tn,
               x_bytes, w_bytes, o_bytes, budget):
    """Shrink (th, tn, tm) until the double-buffered blocks fit `budget`."""
    def footprint(tm_, th_, tn_):
        return (2 * tm_ * dim_in * x_bytes          # x tile (double buffered)
                + 2 * dim_in * th_ * w_bytes        # w1 slice
                + 2 * th_ * w_bytes                 # b1 slice
                + 2 * th_ * tn_ * w_bytes           # w2 slice
                + 2 * tn_ * w_bytes                 # b2 slice
                + 2 * tm_ * tn_ * o_bytes           # output tile
                + tm_ * tn_ * 4)                    # f32 accumulator scratch

    for _ in range(32):
        if footprint(tm, th, tn) <= budget:
            break
        if th > 128:
            new_th = _pick_tile(dim_hidden, th // 2)
            if new_th < th:
                th = new_th
                continue
        if tn > 128:
            new_tn = _pick_tile(dim_out, tn // 2)
            if new_tn < tn:
                tn = new_tn
                continue
        if tm > 8:
            tm = max(8, _round_up(tm // 2, 8))
            continue
        break
    return tm, th, tn


# ----------------------------------------------------------------------------
# Kernel
# ----------------------------------------------------------------------------
def _ffn_kernel(x_ref, w1_ref, b1_ref, w2_ref, b2_ref, o_ref, acc_ref, *,
                n_chunks):
    # x_ref : (tm, dim_in)      input row tile (already in weight dtype)
    # w1_ref: (dim_in, th)      hidden-dim slice of fc_in weight (transposed)
    # b1_ref: (1, th)           hidden-dim slice of fc_in bias
    # w2_ref: (th, tn)          (hidden, out) slice of fc_out weight (transposed)
    # b2_ref: (1, tn)           out-dim slice of fc_out bias
    # o_ref : (tm, tn)          output tile (written on last hidden step)
    # acc_ref: (tm, tn)         f32 accumulator scratch (VMEM)
    j = pl.program_id(2)

    @pl.when(j == 0)
    def _init():
        acc_ref[...] = jnp.zeros_like(acc_ref)

    x = x_ref[...]                       # cast already hoisted to the wrapper
    th = w1_ref.shape[1]
    hc = th // n_chunks

    acc = acc_ref[...]
    # Static unroll: chunk c+1's fc_in matmul (MXU) has no dependence on chunk
    # c's erf-GELU (VPU), so the scheduler can overlap them.
    for c in range(n_chunks):
        lo, hi = c * hc, (c + 1) * hc
        h = jnp.dot(x, w1_ref[:, lo:hi], preferred_element_type=jnp.float32)
        h = h + b1_ref[:, lo:hi].astype(jnp.float32)
        h = _gelu_exact_f32(h)
        acc = acc + jnp.dot(h.astype(w2_ref.dtype), w2_ref[lo:hi, :],
                            preferred_element_type=jnp.float32)
    acc_ref[...] = acc

    @pl.when(j == pl.num_programs(2) - 1)
    def _finish():
        o_ref[...] = (acc_ref[...]
                      + b2_ref[...].astype(jnp.float32)).astype(o_ref.dtype)


# ----------------------------------------------------------------------------
# Wrapper
# ----------------------------------------------------------------------------
@functools.partial(jax.jit, static_argnames=("tm", "th", "tn"))
def feed_forward(x, w1_t, b1, w2_t, b2, *, tm=None, th=None, tn=None):
    """x: [..., dim_in] -> [..., dim_out], matching PyTorch FeedForward.forward.

    Weights are stored pre-transposed: w1_t [dim_in, dim_hidden],
    w2_t [dim_hidden, dim_out]. tm/th/tn override the automatic tile policy.
    """
    orig_shape = x.shape
    dim_in = orig_shape[-1]
    dim_hidden = w1_t.shape[1]
    dim_out = w2_t.shape[1]

    out_dtype = x.dtype
    compute_dtype = w1_t.dtype

    x2 = x.reshape(-1, dim_in)
    if x2.dtype != compute_dtype:
        x2 = x2.astype(compute_dtype)    # cast once here, not per grid step
    m = x2.shape[0]

    x_bytes = jnp.dtype(compute_dtype).itemsize
    w_bytes = jnp.dtype(w1_t.dtype).itemsize
    o_bytes = jnp.dtype(out_dtype).itemsize

    # ---- tile policy -------------------------------------------------------
    tm_eff = _round_up(min(tm if tm is not None else _TM_TARGET,
                           _round_up(m, 8)), 8)
    th_eff = _pick_tile(dim_hidden, th if th is not None else _TH_TARGET)
    if tn is not None:
        tn_eff = _pick_tile(dim_out, tn)
    else:
        tn_eff = dim_out
        # Single row tile on the small-VMEM dual-TensorCore generation (v7x):
        # split N so both cores get a parallel tile.
        if _SMALL_VMEM and m <= tm_eff and dim_out >= 256:
            tn_eff = _pick_tile(dim_out, dim_out // 2)

    tm_eff, th_eff, tn_eff = _fit_tiles(
        dim_in, dim_hidden, dim_out, tm_eff, th_eff, tn_eff,
        x_bytes, w_bytes, o_bytes, _BLOCK_BUDGET)

    m_padded = _round_up(m, tm_eff)
    if m_padded != m:
        x2 = jnp.pad(x2, ((0, m_padded - m), (0, 0)))

    # Split the hidden tile into 2 sub-chunks inside the body (GELU/MXU overlap)
    # whenever the halves stay 128-aligned.
    n_chunks = 2 if th_eff % 256 == 0 else 1

    b1_2d = b1.reshape(1, dim_hidden)
    b2_2d = b2.reshape(1, dim_out)

    m_tiles = m_padded // tm_eff
    n_tiles = dim_out // tn_eff
    grid = (m_tiles, n_tiles, dim_hidden // th_eff)

    # HBM traffic incl. weight re-streaming: W1/b1 once per (row, N) tile,
    # W2/b2 once per row tile, x and out once.
    bytes_accessed = int(
        m_padded * dim_in * x_bytes
        + m_tiles * n_tiles * (w1_t.size * w1_t.dtype.itemsize
                               + b1.size * b1.dtype.itemsize)
        + m_tiles * (w2_t.size * w2_t.dtype.itemsize
                     + b2.size * b2.dtype.itemsize)
        + m_padded * dim_out * o_bytes)
    cost = pl.CostEstimate(
        flops=int(2 * m_padded * dim_hidden * (dim_in + dim_out)),
        transcendentals=int(m_padded * dim_hidden),
        bytes_accessed=bytes_accessed)

    out = pl.pallas_call(
        functools.partial(_ffn_kernel, n_chunks=n_chunks),
        out_shape=jax.ShapeDtypeStruct((m_padded, dim_out), out_dtype),
        grid_spec=pltpu.PrefetchScalarGridSpec(
            num_scalar_prefetch=0,
            grid=grid,
            in_specs=[
                pl.BlockSpec((tm_eff, dim_in), lambda i, n, j: (i, 0)),
                pl.BlockSpec((dim_in, th_eff), lambda i, n, j: (0, j)),
                pl.BlockSpec((1, th_eff), lambda i, n, j: (0, j)),
                pl.BlockSpec((th_eff, tn_eff), lambda i, n, j: (j, n)),
                pl.BlockSpec((1, tn_eff), lambda i, n, j: (0, n)),
            ],
            out_specs=pl.BlockSpec((tm_eff, tn_eff), lambda i, n, j: (i, n)),
            scratch_shapes=[pltpu.VMEM((tm_eff, tn_eff), jnp.float32)],
        ),
        compiler_params=pltpu.CompilerParams(
            dimension_semantics=("parallel", "parallel", "arbitrary"),
            vmem_limit_bytes=_VMEM_LIMIT),
        cost_estimate=cost,
    )(x2, w1_t, b1_2d, w2_t, b2_2d)

    if m_padded != m:
        out = out[:m]
    return out.reshape(*orig_shape[:-1], dim_out)


# ----------------------------------------------------------------------------
# Params / reference
# ----------------------------------------------------------------------------
def init_params(key, dim_in, dim_hidden, dim_out, dtype=jnp.float32):
    """Deterministic init mimicking nn.Linear (uniform in +/- 1/sqrt(fan_in)).
    Weights are stored pre-transposed: (dim_in, dim_hidden), (dim_hidden, dim_out)."""
    k1, k2, k3, k4 = jax.random.split(key, 4)
    bound1 = 1.0 / float(dim_in) ** 0.5
    bound2 = 1.0 / float(dim_hidden) ** 0.5
    w1_t = jax.random.uniform(k1, (dim_in, dim_hidden), jnp.float32, -bound1, bound1)
    b1 = jax.random.uniform(k2, (dim_hidden,), jnp.float32, -bound1, bound1)
    w2_t = jax.random.uniform(k3, (dim_hidden, dim_out), jnp.float32, -bound2, bound2)
    b2 = jax.random.uniform(k4, (dim_out,), jnp.float32, -bound2, bound2)
    return (w1_t.astype(dtype), b1.astype(dtype),
            w2_t.astype(dtype), b2.astype(dtype))


def _ref_ffn(x, w1_t, b1, w2_t, b2):
    """Pure-JAX reference matching the kernel's numerics."""
    xb = x.astype(w1_t.dtype)
    h = jnp.dot(xb, w1_t, preferred_element_type=jnp.float32)
    h = h + b1.astype(jnp.float32)
    h = _gelu_exact_f32(h)
    o = jnp.dot(h.astype(w2_t.dtype), w2_t, preferred_element_type=jnp.float32)
    o = o + b2.astype(jnp.float32)
    return o.astype(x.dtype)


if __name__ == "__main__":
    key = jax.random.PRNGKey(0)
    kx, kx2, kx3, kp, kp2 = jax.random.split(key, 5)

    # --- Check 1: f32, tiny shapes, single-tile grid ---
    dim_in, dim_hidden, dim_out = 32, 64, 32
    batch, seq = 2, 8
    x = jax.random.normal(kx, (batch, seq, dim_in), jnp.float32)
    w1_t, b1, w2_t, b2 = init_params(kp, dim_in, dim_hidden, dim_out)
    out = jax.block_until_ready(feed_forward(x, w1_t, b1, w2_t, b2))
    ref = _ref_ffn(x, w1_t, b1, w2_t, b2)
    assert out.shape == (batch, seq, dim_out)
    assert jnp.allclose(out, ref, atol=1e-5, rtol=1e-5)

    # --- Check 2: ragged row count (exercises the padding path) ---
    x_odd = jax.random.normal(kx2, (3, 5, dim_in), jnp.float32)
    out_odd = jax.block_until_ready(feed_forward(x_odd, w1_t, b1, w2_t, b2))
    ref_odd = _ref_ffn(x_odd, w1_t, b1, w2_t, b2)
    assert out_odd.shape == (3, 5, dim_out)
    assert jnp.allclose(out_odd, ref_odd, atol=1e-5, rtol=1e-5)

    # --- Check 3: bf16 weights, f32 activations (cast hoisted to wrapper) ---
    w1_b, b1_b, w2_b, b2_b = init_params(kp, dim_in, dim_hidden, dim_out,
                                         dtype=jnp.bfloat16)
    out_bf = jax.block_until_ready(feed_forward(x, w1_b, b1_b, w2_b, b2_b))
    ref_bf = _ref_ffn(x, w1_b, b1_b, w2_b, b2_b)
    assert out_bf.shape == (batch, seq, dim_out)
    assert jnp.allclose(out_bf, ref_bf, atol=2e-2, rtol=2e-2)

    # --- Check 4: multi-tile grid (rows x N x hidden) + 2-chunk GELU overlap ---
    d_in2, d_hid2, d_out2 = 128, 512, 256
    x_big = jax.random.normal(kx3, (4, 32, d_in2), jnp.float32)
    w1_t2, b1_2, w2_t2, b2_2 = init_params(kp2, d_in2, d_hid2, d_out2)
    out_big = jax.block_until_ready(
        feed_forward(x_big, w1_t2, b1_2, w2_t2, b2_2, tm=64, th=256, tn=128))
    ref_big = _ref_ffn(x_big, w1_t2, b1_2, w2_t2, b2_2)
    assert out_big.shape == (4, 32, d_out2)
    assert jnp.allclose(out_big, ref_big, atol=5e-3, rtol=5e-3)

    print("KERNEL_OK")
</pallas_src>

<mosaic_0001>
module attributes {stable_mosaic.version = 11 : i64} {
  func.func @_ffn_kernel(%arg0: i32, %arg1: i32, %arg2: i32, %arg3: memref<16x32xf32, #tpu.memory_space<vmem>>, %arg4: memref<32x64xf32, #tpu.memory_space<vmem>>, %arg5: memref<1x64xf32, #tpu.memory_space<vmem>>, %arg6: memref<64x32xf32, #tpu.memory_space<vmem>>, %arg7: memref<1x32xf32, #tpu.memory_space<vmem>>, %arg8: memref<16x32xf32, #tpu.memory_space<vmem>>, %arg9: memref<16x32xf32, #tpu.memory_space<vmem>>) attributes {dimension_semantics = [#tpu.dimension_semantics<parallel>, #tpu.dimension_semantics<parallel>, #tpu.dimension_semantics<arbitrary>], iteration_bounds = array<i64: 1, 1, 1>, scalar_prefetch = 0 : i64, scratch_operands = 1 : i64, tpu.core_type = #tpu.core_type<tc>, window_params = [{transform_indices = @transform_0, window_bounds = array<i64: 16, 32>}, {transform_indices = @transform_1, window_bounds = array<i64: 32, 64>}, {transform_indices = @transform_2, window_bounds = array<i64: 1, 64>}, {transform_indices = @transform_3, window_bounds = array<i64: 64, 32>}, {transform_indices = @transform_4, window_bounds = array<i64: 1, 32>}, {transform_indices = @transform_5, window_bounds = array<i64: 16, 32>}]} {
    %c0_i32 = arith.constant 0 : i32
    %0 = arith.cmpi eq, %arg2, %c0_i32 : i32
    %1 = arith.extui %0 : i1 to i32
    %c0_i32_0 = arith.constant 0 : i32
    %2 = arith.cmpi ne, %1, %c0_i32_0 : i32
    scf.if %2 {
      %cst_18 = arith.constant 0.000000e+00 : f32
      %25 = vector.broadcast %cst_18 : f32 to vector<16x32xf32>
      %c0_19 = arith.constant 0 : index
      %c0_20 = arith.constant 0 : index
      %26 = vector.load %arg9[%c0_19, %c0_20] : memref<16x32xf32, #tpu.memory_space<vmem>>, vector<16x32xf32>
      tpu.vector_store %arg9[%c0_19, %c0_20], %25 {strides = array<i32>} : memref<16x32xf32, #tpu.memory_space<vmem>>, vector<16x32xf32>,
    } else {
    }
    %c0 = arith.constant 0 : index
    %c0_1 = arith.constant 0 : index
    %3 = vector.load %arg3[%c0, %c0_1] : memref<16x32xf32, #tpu.memory_space<vmem>>, vector<16x32xf32>
    %c0_2 = arith.constant 0 : index
    %c0_3 = arith.constant 0 : index
    %4 = vector.load %arg9[%c0_2, %c0_3] : memref<16x32xf32, #tpu.memory_space<vmem>>, vector<16x32xf32>
    %c0_4 = arith.constant 0 : index
    %c0_5 = arith.constant 0 : index
    %5 = vector.load %arg4[%c0_4, %c0_5] : memref<32x64xf32, #tpu.memory_space<vmem>>, vector<32x64xf32>
    %cst = arith.constant dense<0.000000e+00> : vector<16x64xf32>
    %6 = tpu.matmul %3, %5, %cst {dimension_numbers = #tpu.dot_dimension_numbers<[1], [0], [0], [1], [0, 0, 1, 1], [], []>} : vector<16x32xf32>, vector<32x64xf32>, vector<16x64xf32> -> vector<16x64xf32>
    %c0_6 = arith.constant 0 : index
    %c0_7 = arith.constant 0 : index
    %7 = vector.load %arg5[%c0_6, %c0_7] : memref<1x64xf32, #tpu.memory_space<vmem>>, vector<1x64xf32>
    %8 = vector.broadcast %7 : vector<1x64xf32> to vector<16x64xf32>
    %9 = arith.addf %6, %8 : vector<16x64xf32>
    %cst_8 = arith.constant 5.000000e-01 : f32
    %10 = vector.broadcast %cst_8 : f32 to vector<16x64xf32>
    %11 = arith.mulf %10, %9 : vector<16x64xf32>
    %cst_9 = arith.constant 0.707106769 : f32
    %12 = vector.broadcast %cst_9 : f32 to vector<16x64xf32>
    %13 = arith.mulf %9, %12 : vector<16x64xf32>
    %14 = math.erf %13 : vector<16x64xf32>
    %cst_10 = arith.constant 1.000000e+00 : f32
    %15 = vector.broadcast %cst_10 : f32 to vector<16x64xf32>
    %16 = arith.addf %15, %14 : vector<16x64xf32>
    %17 = arith.mulf %11, %16 : vector<16x64xf32>
    %c0_11 = arith.constant 0 : index
    %c0_12 = arith.constant 0 : index
    %18 = vector.load %arg6[%c0_11, %c0_12] : memref<64x32xf32, #tpu.memory_space<vmem>>, vector<64x32xf32>
    %cst_13 = arith.constant dense<0.000000e+00> : vector<16x32xf32>
    %19 = tpu.matmul %17, %18, %cst_13 {dimension_numbers = #tpu.dot_dimension_numbers<[1], [0], [0], [1], [0, 0, 1, 1], [], []>} : vector<16x64xf32>, vector<64x32xf32>, vector<16x32xf32> -> vector<16x32xf32>
    %20 = arith.addf %4, %19 : vector<16x32xf32>
    %c0_14 = arith.constant 0 : index
    %c0_15 = arith.constant 0 : index
    %21 = vector.load %arg9[%c0_14, %c0_15] : memref<16x32xf32, #tpu.memory_space<vmem>>, vector<16x32xf32>
    tpu.vector_store %arg9[%c0_14, %c0_15], %20 {strides = array<i32>} : memref<16x32xf32, #tpu.memory_space<vmem>>, vector<16x32xf32>,
    %c0_i32_16 = arith.constant 0 : i32
    %22 = arith.cmpi eq, %arg2, %c0_i32_16 : i32
    %23 = arith.extui %22 : i1 to i32
    %c0_i32_17 = arith.constant 0 : i32
    %24 = arith.cmpi ne, %23, %c0_i32_17 : i32
    scf.if %24 {
      %c0_18 = arith.constant 0 : index
      %c0_19 = arith.constant 0 : index
      %25 = vector.load %arg9[%c0_18, %c0_19] : memref<16x32xf32, #tpu.memory_space<vmem>>, vector<16x32xf32>
      %c0_20 = arith.constant 0 : index
      %c0_21 = arith.constant 0 : index
      %26 = vector.load %arg7[%c0_20, %c0_21] : memref<1x32xf32, #tpu.memory_space<vmem>>, vector<1x32xf32>
      %27 = vector.broadcast %26 : vector<1x32xf32> to vector<16x32xf32>
      %28 = arith.addf %25, %27 : vector<16x32xf32>
      %c0_22 = arith.constant 0 : index
      %c0_23 = arith.constant 0 : index
      %29 = vector.load %arg8[%c0_22, %c0_23] : memref<16x32xf32, #tpu.memory_space<vmem>>, vector<16x32xf32>
      tpu.vector_store %arg8[%c0_22, %c0_23], %28 {strides = array<i32>} : memref<16x32xf32, #tpu.memory_space<vmem>>, vector<16x32xf32>,
    } else {
    }
    return
  }
  func.func @transform_0(%arg0: i32, %arg1: i32, %arg2: i32) -> (i32, i32) {
    %c0_i32 = arith.constant 0 : i32
    %c0_i32_0 = arith.constant 0 : i32
    return %arg0, %c0_i32 : i32, i32
  }
  func.func @transform_1(%arg0: i32, %arg1: i32, %arg2: i32) -> (i32, i32) {
    %c0_i32 = arith.constant 0 : i32
    %c0_i32_0 = arith.constant 0 : i32
    return %c0_i32, %arg2 : i32, i32
  }
  func.func @transform_2(%arg0: i32, %arg1: i32, %arg2: i32) -> (i32, i32) {
    %c0_i32 = arith.constant 0 : i32
    %c0_i32_0 = arith.constant 0 : i32
    return %c0_i32, %arg2 : i32, i32
  }
  func.func @transform_3(%arg0: i32, %arg1: i32, %arg2: i32) -> (i32, i32) {
    %c0_i32 = arith.constant 0 : i32
    return %arg2, %arg1 : i32, i32
  }
  func.func @transform_4(%arg0: i32, %arg1: i32, %arg2: i32) -> (i32, i32) {
    %c0_i32 = arith.constant 0 : i32
    %c0_i32_0 = arith.constant 0 : i32
    return %c0_i32, %arg1 : i32, i32
  }
  func.func @transform_5(%arg0: i32, %arg1: i32, %arg2: i32) -> (i32, i32) {
    %c0_i32 = arith.constant 0 : i32
    return %arg0, %arg1 : i32, i32
  }
}

</mosaic_0001>

<bundles_post_ra>
// kernel: feed_forward.1
= control target key start
LH: loop header
LB: loop body
LE: loop exit
PB: predicated region body
PF: predicated region fallthrough
CT: control target
= control target key end

     0   :  { %vm25_vm0 = vcmask 261120   ;;  %s471_s0 = inlined_call_operand.vmem [shape: f32[16,32], index: 0, kind: input, shape index: {}]   ;;  %s472_s1 = inlined_call_operand.vmem [shape: f32[32,64], index: 1, kind: input, shape index: {}]   ;;  %s473_s2 = inlined_call_operand.vmem [shape: f32[1,64], index: 2, kind: input, shape index: {}]   ;;  %s474_s3 = inlined_call_operand.vmem [shape: f32[64,32], index: 3, kind: input, shape index: {}]   ;;  %s475_s4 = inlined_call_operand.vmem [shape: f32[1,32], index: 4, kind: input, shape index: {}]   ;;  %s476_s5 = inlined_call_operand.hbm [shape: f32[16,32], index: 5, kind: output, shape index: {}]  }
   0x1   :  { %v32_v0 = vld [vmem:[%s472_s1] sm:$0xff]  ;;  %v33_v1 = vld [vmem:[%s472_s1 + $0x8] sm:$0xff]  ;;  %v34_v2 = vld [vmem:[%s472_s1 + $0x10] sm:$0xff] }
   0x2   :  { %v313_v3 = vpack.c.bf16 %v33_v1, %v32_v0  ;;  %v35_v4 = vld [vmem:[%s472_s1 + $0x18] sm:$0xff]  ;;  %v28_v5 = vld [vmem:[%s471_s0] sm:$0xff] }
   0x3   :  { %v317_v6 = vpack.c.bf16 %v35_v4, %v34_v2  ;;  %291 = vmatprep.mubr.msk.f32.mxu0 %vm25_vm0, %v28_v5 }
   0x4   :  { %10 = vsyncpa [#allocation4], 0  ;;  %314 = vmatprep.subr.bf16.mxu0 %v313_v3  ;;  %v29_v7 = vld [vmem:[%s471_s0 + $0x8] sm:$0xff]  ;;  %v135_v8 = vld [vmem:[%s474_s3] sm:$0xff]  ;;  %v369_v20 = vmov 0.0   ;;  %vm143_vm1 = vcmask 523264  }
   0x5   :  { %316 = vmatpush3.bf16.msra.mxu0 %v313_v3  ;;  %v136_v9 = vld [vmem:[%s474_s3 + $0x8] sm:$0xff]  ;;  %v137_v11 = vld [vmem:[%s474_s3 + $0x10] sm:$0xff]  ;;  %v138_v12 = vld [vmem:[%s474_s3 + $0x18] sm:$0xff]  ;;  %27 = vst.msk [vmem:[#allocation2 + $0x8] sm:$0xff] %vm25_vm0, %v369_v20  ;;  %s370_s21 = smov [#allocation3]  }
   0x6   :  { %318 = vmatprep.subr.bf16.mxu0 %v317_v6  ;;  %v321_v10 = vpack.c.bf16 %v136_v9, %v135_v8  ;;  %v325_v13 = vpack.c.bf16 %v138_v12, %v137_v11  ;;  %v139_v14 = vld [vmem:[%s474_s3 + $0x20] sm:$0xff]  ;;  %v140_v15 = vld [vmem:[%s474_s3 + $0x28] sm:$0xff]  ;;  %v141_v17 = vld [vmem:[%s474_s3 + $0x30] sm:$0xff]  ;;  %26 = vst.msk [vmem:[#allocation2] sm:$0xff] %vm25_vm0, %v369_v20  ;;  %s250_s22 = sshll.u32 %s370_s21, 4  ;;  %s251_s22 = int_to_ptr.vmem [resolvable:$true] %s250_s22 }
   0x7   :  { %v329_v16 = vpack.c.bf16 %v140_v15, %v139_v14  ;;  %v142_v18 = vld [vmem:[%s474_s3 + $0x38] sm:$0xff]  ;;  %v261_v21 = vld [vmem:[%s473_s2] ss:$0 sm:$0xff]  ;;  %s345_s23 = scalar_lea.vmem %s251_s22, 256  ;;  %p350_p1 = scmp.lt.s32.totalorder %s251_s22, %s251_s22 }
   0x8   :  { %322 = vmatprep.subr.bf16.mxu1 %v321_v10  ;;  %v333_v19 = vpack.c.bf16 %v142_v18, %v141_v17  ;;  %v266_v42 = vld [vmem:[%s475_s4] ss:$0 sm:$0xff]  ;;  %p346_p0 = scmp.ne.s32.totalorder %s251_s22, %s345_s23  ;;  %p351_p2 = scmp.lt.s32.totalorder %s345_s23, %s345_s23 }
   0x9   :  { %320 = vmatpush3.bf16.msra.mxu0 %v317_v6  ;;  %324 = vmatpush3.bf16.msra.mxu1 %v321_v10 }
   0xa   :  { %326 = vmatprep.subr.bf16.mxu1 %v325_v13  ;;  %p352_p3 = por %p351_p2, %p350_p1 }
   0xc   :  { %292 = vmatmul.mubr.msk.f32.vlgmr.msra.gmra.mrb[0].mxu0 %vm25_vm0, %v29_v7  ;;  %v31_v36 = vld [vmem:[#allocation2 + $0x8] sm:$0xff]  ;;  %p353_p4 = pnand %p352_p3, %p346_p0 }
   0xd   :  { %328 = vmatpush3.bf16.msra.mxu1 %v325_v13  ;;  %v30_v37 = vld [vmem:[#allocation2] sm:$0xff] }
   0xe   :  { %330 = vmatprep.subr.bf16.mxu1 %v329_v16 }
  0x11   :  { %332 = vmatpush3.bf16.msra.mxu1 %v329_v16 }
  0x12   :  { %334 = vmatprep.subr.bf16.mxu1 %v333_v19 }
  0x15   :  { %336 = vmatpush3.bf16.msra.mxu1 %v333_v19 }
  0xdf   :  { %v293_v22 = vpop.f32.mrb[0].mxu0 }
  0xe0   :  { %v122_v23 = vadd.f32 %v293_v22, %v261_v21  ;;  %v116_v24 = vpop.f32.mrb[1].mxu0 }
  0xe1   :  { %v117_v25 = vadd.f32 %v261_v21, %v116_v24 }
  0xe2   :  { %v128_v26 = vmul.f32 0.70710677, %v122_v23  ;;  %v126_v33 = vmul.f32 0.5, %v122_v23 }
  0xe3   :  { %v127_v27 = vmul.f32 0.70710677, %v117_v25  ;;  %v125_v31 = vmul.f32 0.5, %v117_v25 }
  0xe4   :  { %341 = verf.f32 %v128_v26 }
  0xe5   :  { %343 = verf.f32 %v127_v27 }
  0xee   :  { %v342_v28 = vpop.eup %341 }
  0xef   :  { %v344_v29 = vpop.eup %343  ;;  %v132_v30 = vadd.f32 1.0, %v342_v28 }
  0xf0   :  { %v131_v32 = vadd.f32 1.0, %v344_v29 }
  0xf1   :  { %v134_v35 = vmul.f32 %v132_v30, %v126_v33 }
  0xf2   :  { %v133_v34 = vmul.f32 %v131_v32, %v125_v31 }
  0xf4   :  { %310 = vmatprep.mubr.msk.f32.mxu1 %vm143_vm1, %v133_v34 }
  0xf5   :  { %311 = vmatmul.mubr.msk.f32.vlgmr.msra.gmra.mrb[0].mxu1 %vm143_vm1, %v134_v35 }
 0x1c8   :  { %v312_v38 = vpop.f32.mrb[0].mxu1 }
 0x1c9   :  { %v226_v39 = vadd.f32 %v312_v38, %v31_v36  ;;  %v216_v40 = vpop.f32.mrb[1].mxu1 }
 0x1ca   :  { %v225_v41 = vadd.f32 %v216_v40, %v30_v37 }
 0x1cb   :  { %228 = vst.msk [vmem:[#allocation2 + $0x8] sm:$0xff] %vm25_vm0, %v226_v39 }
 0x1cc   :  { %227 = vst.msk [vmem:[#allocation2] sm:$0xff] %vm25_vm0, %v225_v41 }
 0x1d2   :  { %v233_v43 = vld [vmem:[#allocation2 + $0x8] sm:$0xff] }
 0x1d3   :  { %v232_v44 = vld [vmem:[#allocation2] sm:$0xff]  ;;  %v242_v45 = vadd.f32 %v266_v42, %v233_v43 }
 0x1d4   :  { %v241_v46 = vadd.f32 %v266_v42, %v232_v44 }
 0x1d5   :  { %244 = vst.msk [vmem:[#allocation3 + $0x8] sm:$0xff] %vm25_vm0, %v242_v45 }
 0x1d6   :  { %243 = vst.msk [vmem:[#allocation3] sm:$0xff] %vm25_vm0, %v241_v46 }
 0x1d7   :  { %356 = shalt.err (!%p353_p4)
}
 0x1d8   :  { %s357_s25 = scalar_lea.hbm %s476_s5, 256 }
 0x1d9   :  { %p358_p5 = scmp.ne.s32.totalorder %s476_s5, %s357_s25  ;;  %p361_p6 = scmp.lt.u32.totalorder %s357_s25, %s476_s5 }
 0x1db   :  { %p363_p7 = pnand %p361_p6, %p358_p5 }
 0x1dd   :  { %366 = shalt.err (!%p363_p7)
}
 0x1de   :  { %s371_s30 = smov 128   ;;  %s372_s1 = smov 8  }
 0x1df   :  { %256 = dma.vmem_to_hbm [thread:$0]  %s251_s22, 256, %s476_s5, [#allocation4], %s371_s30, %s371_s30, %s372_s1  }
 0x1e0   :  { %367 = dma.done.wait [#allocation4], 256  }
 0x1e1   :  { %368 = vsyncadd [#allocation4], 4294967040 }
 0x1e2   :  { %260 = vsyncpa [#allocation4], 1 }

</bundles_post_ra>
